<compile_context>
chip_gen: v6e
topology: v6e:2x2x1
jax: 0.10.0
libtpu: 0.0.40
codegen_flags: <defaults>
</compile_context>

<pallas_src>
import math

import jax
import jax.numpy as jnp
from jax.experimental import pallas as pl
from jax.experimental.pallas import tpu as pltpu


def _layer_scale_kernel(x_ref, g_ref, o_ref):
    # x_ref: (TM, C) tile, g_ref: (1, C) resident gamma -> VPU broadcast multiply.
    o_ref[...] = x_ref[...] * g_ref[...]


def layer_scale(x: jax.Array, gamma: jax.Array, *, target_rows: int = 1024) -> jax.Array:
    """Computes x * gamma (gamma broadcast over every axis of x except the last)."""
    orig_shape = x.shape
    D = orig_shape[-1]
    assert gamma.shape == (D,), (gamma.shape, D)
    R = math.prod(orig_shape[:-1]) if len(orig_shape) > 1 else 1

    g = gamma.astype(x.dtype)  # matches PyTorch: param dtype follows module/activation dtype

    # ---- pick a lane-dense 2D presentation of the data -----------------------
    if D % 128 == 0:
        rows, C = R, D
        g_row = g
    elif 128 % D == 0 and (R * D) % 128 == 0:
        # Fold several logical rows into one 128-wide lane row; the gamma
        # pattern repeats exactly per lane group, so tiling gamma keeps the
        # multiply correct while making every store lane-dense.
        fold = 128 // D
        rows, C = (R * D) // 128, 128
        g_row = jnp.tile(g, fold)
    else:
        # Fallback: keep D on the lane axis (masked stores if D % 128 != 0).
        rows, C = R, D
        g_row = g

    x2 = x.reshape(rows, C)
    g2 = g_row.reshape(1, C)

    # ---- row-tile sizing ------------------------------------------------------
    itemsize = jnp.dtype(x.dtype).itemsize
    sub = max(8, 32 // itemsize)  # native sublane packing: 8 f32 / 16 bf16 / 32 i8
    # Keep double-buffered (x tile + out tile) well under the v7x 32 MiB scoped
    # VMEM default: 4 * TM * C * itemsize <= 16 MiB.
    vmem_budget = 16 * 1024 * 1024
    tm_cap = max(sub, vmem_budget // (4 * C * itemsize))
    tm = min(target_rows, tm_cap, rows)
    tm = (tm // sub) * sub
    if tm == 0:
        tm = rows  # tiny input: single full-extent block (allowed by the (8,128) rule)

    grid = (pl.cdiv(rows, tm),)

    out2 = pl.pallas_call(
        _layer_scale_kernel,
        out_shape=jax.ShapeDtypeStruct((rows, C), x.dtype),
        grid_spec=pltpu.PrefetchScalarGridSpec(
            num_scalar_prefetch=0,
            grid=grid,
            in_specs=[
                pl.BlockSpec((tm, C), lambda i: (i, 0)),
                pl.BlockSpec((1, C), lambda i: (0, 0)),  # gamma resident in VMEM
            ],
            out_specs=pl.BlockSpec((tm, C), lambda i: (i, 0)),
        ),
        compiler_params=pltpu.CompilerParams(
            dimension_semantics=("parallel",),
        ),
    )(x2, g2)
    return out2.reshape(orig_shape)


if __name__ == "__main__":
    key = jax.random.PRNGKey(0)
    k0, k1 = jax.random.split(key)
    init_values = 1e-5

    # Module-sized small test: (B, N, D) tokens with D=32 channels
    # (exercises the fold-to-128-lanes path; D=32 < 128).
    B, N, D = 2, 8, 32
    x = jax.random.normal(k0, (B, N, D), dtype=jnp.float32)
    gamma = init_values * jnp.ones((D,), dtype=jnp.float32)
    out = layer_scale(x, gamma)
    jax.block_until_ready(out)
    ref = x * gamma.reshape(1, 1, D)
    assert out.shape == x.shape and out.dtype == x.dtype
    assert jnp.allclose(out, ref, atol=1e-7, rtol=1e-6)

    # Second small check exercising the lane-dense (D % 128 == 0) multi-step
    # row-tiled path (forces grid > 1 with a small target_rows).
    B2, N2, D2 = 2, 24, 128
    x2 = jax.random.normal(k1, (B2, N2, D2), dtype=jnp.float32)
    gamma2 = init_values * jnp.ones((D2,), dtype=jnp.float32)
    out2 = layer_scale(x2, gamma2, target_rows=16)
    jax.block_until_ready(out2)
    ref2 = x2 * gamma2.reshape(1, 1, D2)
    assert out2.shape == x2.shape and out2.dtype == x2.dtype
    assert jnp.allclose(out2, ref2, atol=1e-7, rtol=1e-6)

    print("KERNEL_OK")
</pallas_src>

<mosaic_0001>
module attributes {stable_mosaic.version = 11 : i64} {
  func.func @_layer_scale_kernel(%arg0: i32, %arg1: memref<4x128xf32, #tpu.memory_space<vmem>>, %arg2: memref<1x128xf32, #tpu.memory_space<vmem>>, %arg3: memref<4x128xf32, #tpu.memory_space<vmem>>) attributes {dimension_semantics = [#tpu.dimension_semantics<parallel>], iteration_bounds = array<i64: 1>, scalar_prefetch = 0 : i64, scratch_operands = 0 : i64, tpu.core_type = #tpu.core_type<tc>, window_params = [{transform_indices = @transform_0, window_bounds = array<i64: 4, 128>}, {pipeline_mode = #tpu.pipeline_mode<synchronous>, transform_indices = @transform_1, window_bounds = array<i64: 1, 128>}, {transform_indices = @transform_2, window_bounds = array<i64: 4, 128>}]} {
    %c0 = arith.constant 0 : index
    %c0_0 = arith.constant 0 : index
    %0 = vector.load %arg1[%c0, %c0_0] : memref<4x128xf32, #tpu.memory_space<vmem>>, vector<4x128xf32>
    %c0_1 = arith.constant 0 : index
    %c0_2 = arith.constant 0 : index
    %1 = vector.load %arg2[%c0_1, %c0_2] : memref<1x128xf32, #tpu.memory_space<vmem>>, vector<1x128xf32>
    %2 = vector.broadcast %1 : vector<1x128xf32> to vector<4x128xf32>
    %3 = arith.mulf %0, %2 : vector<4x128xf32>
    %c0_3 = arith.constant 0 : index
    %c0_4 = arith.constant 0 : index
    %4 = vector.load %arg3[%c0_3, %c0_4] : memref<4x128xf32, #tpu.memory_space<vmem>>, vector<4x128xf32>
    tpu.vector_store %arg3[%c0_3, %c0_4], %3 {strides = array<i32>} : memref<4x128xf32, #tpu.memory_space<vmem>>, vector<4x128xf32>,
    return
  }
  func.func @transform_0(%arg0: i32) -> (i32, i32) {
    %c0_i32 = arith.constant 0 : i32
    %c0_i32_0 = arith.constant 0 : i32
    return %arg0, %c0_i32 : i32, i32
  }
  func.func @transform_1(%arg0: i32) -> (i32, i32) {
    %c0_i32 = arith.constant 0 : i32
    %c0_i32_0 = arith.constant 0 : i32
    %c0_i32_1 = arith.constant 0 : i32
    return %c0_i32, %c0_i32_0 : i32, i32
  }
  func.func @transform_2(%arg0: i32) -> (i32, i32) {
    %c0_i32 = arith.constant 0 : i32
    %c0_i32_0 = arith.constant 0 : i32
    return %arg0, %c0_i32 : i32, i32
  }
}

</mosaic_0001>

<bundles_post_ra>
// kernel: tpu_custom_call.1
= control target key start
LH: loop header
LB: loop body
LE: loop exit
PB: predicated region body
PF: predicated region fallthrough
CT: control target
= control target key end

     0   :  { %7 = vsyncpa [#allocation3], 0  ;;  %s122_s0 = inlined_call_operand.hbm [shape: f32[4,128], index: 0, kind: input, shape index: {}]   ;;  %s123_s1 = inlined_call_operand.vmem [shape: f32[1,128], index: 1, kind: input, shape index: {}]   ;;  %s124_s2 = inlined_call_operand.hbm [shape: f32[4,128], index: 2, kind: output, shape index: {}]  }
   0x1   :  { %8 = vsyncpa [#allocation4], 0  ;;  %s96_s9 = smov [#allocation2]  }
   0x2   :  { %s15_s10 = sshll.u32 %s96_s9, 4  ;;  %s16_s10 = int_to_ptr.vmem [resolvable:$true] %s15_s10 }
   0x3   :  { %s60_s11 = scalar_lea.vmem %s16_s10, 64  ;;  %p65_p1 = scmp.lt.s32.totalorder %s16_s10, %s16_s10 }
   0x4   :  { %p61_p0 = scmp.ne.s32.totalorder %s16_s10, %s60_s11  ;;  %p66_p2 = scmp.lt.s32.totalorder %s60_s11, %s60_s11 }
   0x6   :  { %p67_p3 = por %p66_p2, %p65_p1 }
   0x8   :  { %p68_p4 = pnand %p67_p3, %p61_p0 }
   0xa   :  { %71 = shalt.err (!%p68_p4)
}
   0xb   :  { %18 = dma.hbm_to_vmem [thread:$0]  %s122_s0, 64, %s16_s10, [#allocation3]  }
   0xc   :  { %92 = dma.done.wait [#allocation3], 64  }
   0xd   :  { %93 = vsyncadd [#allocation3], 4294967232  ;;  %s97_s14 = smov [#allocation5]   ;;  %v24_v0 = vld [vmem:[#allocation2] sm:$0xf] }
   0xe   :  { %s40_s15 = sshll.u32 %s97_s14, 4  ;;  %v49_v1 = vld [vmem:[%s123_s1] ss:$0 sm:$0xff]  ;;  %s41_s15 = int_to_ptr.vmem [resolvable:$true] %s40_s15 }
   0xf   :  { %v32_v2 = vmul.f32 %v49_v1, %v24_v0  ;;  %s72_s18 = scalar_lea.vmem %s41_s15, 64  ;;  %p77_p6 = scmp.lt.s32.totalorder %s41_s15, %s41_s15 }
  0x10   :  { %p73_p5 = scmp.ne.s32.totalorder %s41_s15, %s72_s18  ;;  %p78_p7 = scmp.lt.s32.totalorder %s72_s18, %s72_s18 }
  0x11   :  { %33 = vst [vmem:[#allocation5] sm:$0xf] %v32_v2 }
  0x12   :  { %p79_p8 = por %p78_p7, %p77_p6 }
  0x14   :  { %p80_p9 = pnand %p79_p8, %p73_p5 }
  0x16   :  { %83 = shalt.err (!%p80_p9)
}
  0x17   :  { %43 = dma.vmem_to_hbm [thread:$0]  %s41_s15, 64, %s124_s2, [#allocation4]  }
  0x18   :  { %94 = dma.done.wait [#allocation4], 64  }
  0x19   :  { %95 = vsyncadd [#allocation4], 4294967232 }
  0x1a   :  { %47 = vsyncpa [#allocation3], 1 }
  0x1b   :  { %48 = vsyncpa [#allocation4], 1 }

</bundles_post_ra>
